<compile_context>
chip_gen: v7x
topology: tpu7x:2x2x1
jax: 0.10.0
libtpu: 0.0.40
codegen_flags: <defaults>
</compile_context>

<pallas_src>
import functools
import math

import jax
import jax.numpy as jnp
from jax.experimental import pallas as pl
from jax.experimental.pallas import tpu as pltpu

_HALF_LOG_2PI = 0.5 * math.log(2.0 * math.pi)

# diagnostics column order inside the packed output slab (after w, z)
_DIAG_NAMES = ["m1", "log_px", "kl_w", "kl_z", "hw", "hz", "qy", "qc", "m", "log_qy"]
_NDIAG_CORE = len(_DIAG_NAMES)          # 10 diagnostics exposed to the user
_NDIAG_COLS = _NDIAG_CORE + 2           # + log_qyz, log_qc (for the aux losses)


def _round_up(n, m):
    return ((n + m - 1) // m) * m


def _vi_adv_marg_kernel(
    # scalar coefficients (SMEM): [bx, bw, bz, bhw, bhz, byw]
    betas_ref,
    # per-tile inputs
    x_ref, y_ref, c_ref, eps_ref,
    # fused parameters (full, grid-invariant)
    wenc_ref, wy_ref, benc_ref,      # encoder: x @ wenc + y*wy + benc
    wdec_ref, bdec_ref,              # decoder+heads: [w|z] @ wdec + bdec -> [x_hat | qy(w) aux_y(z) aux_c(w)]
    # output slab: [w | z | diag(12) | zero pad] -> 128 lanes
    out_ref,
    *, dw, dz, out_pad,
):
    f32 = jnp.float32
    x = x_ref[...]                    # [TB, D] f32
    y = y_ref[...]                    # [TB, 1]
    c = c_ref[...]                    # [TB, 1]
    eps = eps_ref[...]                # [TB, Dw+Dz]
    dwz = dw + dz
    d = x.shape[1]

    bx = betas_ref[0]
    bw = betas_ref[1]
    bz = betas_ref[2]
    bhw = betas_ref[3]
    bhz = betas_ref[4]
    byw = betas_ref[5]

    # ---- fused Gaussian encoders q(w|x,y), q(z|x): one bf16 MXU pass over x
    enc = jnp.dot(x.astype(jnp.bfloat16), wenc_ref[...],
                  preferred_element_type=f32)
    enc = enc + y * wy_ref[...] + benc_ref[...]        # [TB, 2*(Dw+Dz)]
    mu = enc[:, :dwz]
    logstd = enc[:, dwz:]
    std = jnp.exp(logstd)
    wz = mu + std * eps                                # reparameterized [w | z]
    w = wz[:, :dw]
    z = wz[:, dw:]

    # ---- fused decoder p(x|w,z) + Bernoulli heads: ONE bf16 MXU pass --------
    # columns [0:D) = decoder mean, columns [D:D+3) = [q(y|w), aux_y(z), aux_c(w)]
    dec = (jnp.dot(wz.astype(jnp.bfloat16), wdec_ref[...],
                   preferred_element_type=f32) + bdec_ref[...])

    # per-datapoint reductions (== reduce() in the PyTorch reference);
    # residual folded into the reduction (no separate x_hat / r temporaries),
    # additive 0.5*log(2*pi) constants hoisted out of the sums.
    log_px = (-0.5 * jnp.sum(jnp.square(x - dec[:, :d]), axis=1, keepdims=True)
              - d * _HALF_LOG_2PI)
    log_pw = -0.5 * jnp.sum(w * w, axis=1, keepdims=True) - dw * _HALF_LOG_2PI
    log_pz = -0.5 * jnp.sum(z * z, axis=1, keepdims=True) - dz * _HALF_LOG_2PI
    # reparameterization identity: (wz - mu)/std == eps
    eps_w = eps[:, :dw]
    eps_z = eps[:, dw:]
    log_qw = (-0.5 * jnp.sum(eps_w * eps_w, axis=1, keepdims=True)
              - jnp.sum(logstd[:, :dw], axis=1, keepdims=True)
              - dw * _HALF_LOG_2PI)
    log_qz = (-0.5 * jnp.sum(eps_z * eps_z, axis=1, keepdims=True)
              - jnp.sum(logstd[:, dw:], axis=1, keepdims=True)
              - dz * _HALF_LOG_2PI)

    # ---- Bernoulli heads (logits already computed by the fused matmul) ------
    head = dec[:, d:]                                   # [TB, 3]
    sp = jax.nn.softplus(head)                          # reused (log_prob + entropy)
    sg = jax.nn.sigmoid(head)
    ent = sp - head * sg                                # Bernoulli entropy

    log_qyw = y * head[:, 0:1] - sp[:, 0:1]             # q(y|w).log_prob(y)
    hz = ent[:, 1:2]                                    # entropy of aux_y(z)
    hw = ent[:, 2:3]                                    # entropy of aux_c(w)
    log_qyz = y * head[:, 1:2] - sp[:, 1:2]             # aux_y(z).log_prob(y)
    log_qc = c * head[:, 2:3] - sp[:, 2:3]              # aux_c(w).log_prob(c)
    qy = jnp.exp(log_qyz)
    qc = jnp.exp(log_qc)

    kl_w = log_qw - log_pw
    kl_z = log_qz - log_pz
    m1 = -bx * log_px + bw * kl_w + bz * kl_z - byw * log_qyw
    m = m1 - bhz * hz - bhw * hw

    # ---- single lane-dense (128-wide) store of the per-sample result slab ---
    parts = [w, z,
             m1, log_px, kl_w, kl_z, hw, hz, qy, qc, m, log_qyw,
             log_qyz, log_qc]
    if out_pad:
        parts.append(jnp.zeros((w.shape[0], out_pad), f32))
    out_ref[...] = jnp.concatenate(parts, axis=1)


def init_params(key, D, Dw, Dz):
    ks = jax.random.split(key, 9)
    s = 0.02
    p = {}
    # q(w|x,y): produces [mu_w | logstd_w]
    p["enc_w_x"] = jax.random.normal(ks[0], (D, 2 * Dw), jnp.float32) * s
    p["enc_w_y"] = jax.random.normal(ks[1], (1, 2 * Dw), jnp.float32) * s
    p["enc_w_b"] = jnp.zeros((1, 2 * Dw), jnp.float32)
    # q(z|x): produces [mu_z | logstd_z]
    p["enc_z_x"] = jax.random.normal(ks[2], (D, 2 * Dz), jnp.float32) * s
    p["enc_z_b"] = jnp.zeros((1, 2 * Dz), jnp.float32)
    # p(x|w,z) decoder
    p["dec_w"] = jax.random.normal(ks[3], (Dw, D), jnp.float32) * s
    p["dec_z"] = jax.random.normal(ks[4], (Dz, D), jnp.float32) * s
    p["dec_b"] = jnp.zeros((1, D), jnp.float32)
    # q(y|w)
    p["qy_w"] = jax.random.normal(ks[5], (Dw, 1), jnp.float32) * s
    p["qy_b"] = jnp.zeros((1, 1), jnp.float32)
    # aux_y(z), aux_c(w)
    p["aux_y_w"] = jax.random.normal(ks[6], (Dz, 1), jnp.float32) * s
    p["aux_y_b"] = jnp.zeros((1, 1), jnp.float32)
    p["aux_c_w"] = jax.random.normal(ks[7], (Dw, 1), jnp.float32) * s
    p["aux_c_b"] = jnp.zeros((1, 1), jnp.float32)
    return p


def _pack_params(p, Dw, Dz):
    """Fuse the individual linear maps into 2 matmul weights (encoder, decoder+heads)."""
    # encoder columns: [mu_w | mu_z | logstd_w | logstd_z]
    wenc = jnp.concatenate(
        [p["enc_w_x"][:, :Dw], p["enc_z_x"][:, :Dz],
         p["enc_w_x"][:, Dw:], p["enc_z_x"][:, Dz:]], axis=1)
    zdz = jnp.zeros((1, Dz), jnp.float32)
    wy_enc = jnp.concatenate(
        [p["enc_w_y"][:, :Dw], zdz, p["enc_w_y"][:, Dw:], zdz], axis=1)
    benc = jnp.concatenate(
        [p["enc_w_b"][:, :Dw], p["enc_z_b"][:, :Dz],
         p["enc_w_b"][:, Dw:], p["enc_z_b"][:, Dz:]], axis=1)
    # heads: columns [q(y|w), aux_y(z), aux_c(w)]; zero-masked blocks keep the
    # per-module input restriction (aux_y only sees z, aux_c/qy only see w).
    zw = jnp.zeros((Dw, 1), jnp.float32)
    zz = jnp.zeros((Dz, 1), jnp.float32)
    whead = jnp.concatenate(
        [jnp.concatenate([p["qy_w"], zw, p["aux_c_w"]], axis=1),
         jnp.concatenate([zz, p["aux_y_w"], zz], axis=1)], axis=0)     # (Dw+Dz, 3)
    bhead = jnp.concatenate([p["qy_b"], p["aux_y_b"], p["aux_c_b"]], axis=1)
    # decoder rows: [w-rows ; z-rows], heads appended as the last 3 columns so
    # decoder + heads are ONE bf16 matmul inside the kernel.
    wdec = jnp.concatenate(
        [jnp.concatenate([p["dec_w"], p["dec_z"]], axis=0), whead], axis=1)
    bdec = jnp.concatenate([p["dec_b"], bhead], axis=1)
    return dict(
        wenc=wenc.astype(jnp.bfloat16), wy_enc=wy_enc, benc=benc,
        wdec=wdec.astype(jnp.bfloat16), bdec=bdec)


def vi_adv_marg_forward(params, x, y, c, eps_w, eps_z, *,
                        bx, bw, bz, bhw, bhz, byw, byz, bc, tile_b=1024):
    B = x.shape[0]
    x_flat = x.reshape(B, -1).astype(jnp.float32)
    D = x_flat.shape[1]
    Dw = eps_w.shape[1]
    Dz = eps_z.shape[1]
    y2 = y.reshape(B, 1).astype(jnp.float32)
    c2 = c.reshape(B, 1).astype(jnp.float32)
    eps = jnp.concatenate([eps_w, eps_z], axis=1).astype(jnp.float32)

    packed = _pack_params(params, Dw, Dz)
    betas = jnp.array([bx, bw, bz, bhw, bhz, byw], jnp.float32)

    # batch tiling: large tiles to amortize per-step pipeline overhead; the
    # edge block is handled by Pallas (no wrapper-side jnp.pad copy of x).
    # On v6e/v5e tile_b and vmem_limit_bytes can be raised further (128 MiB
    # physical); 48 MiB keeps v7x's 64 MiB-per-TensorCore budget safe.
    tb = min(tile_b, _round_up(B, 8))
    grid = (pl.cdiv(B, tb),)

    # lane-dense output slab: pad 28 real columns up to a multiple of 128 so
    # the kernel issues one unmasked store per tile.
    n_core = Dw + Dz + _NDIAG_COLS
    out_w = _round_up(max(n_core, 128), 128)
    out_pad = out_w - n_core

    def row_spec(n):
        return pl.BlockSpec((tb, n), lambda i: (i, 0))

    def full_spec(arr):
        return pl.BlockSpec(arr.shape, lambda i: (0,) * arr.ndim)

    kern = functools.partial(_vi_adv_marg_kernel, dw=Dw, dz=Dz, out_pad=out_pad)

    out = pl.pallas_call(
        kern,
        out_shape=jax.ShapeDtypeStruct((B, out_w), jnp.float32),
        grid=grid,
        in_specs=[pl.BlockSpec(memory_space=pltpu.MemorySpace.SMEM),   # betas
                  row_spec(D), row_spec(1), row_spec(1), row_spec(Dw + Dz),
                  full_spec(packed["wenc"]), full_spec(packed["wy_enc"]),
                  full_spec(packed["benc"]),
                  full_spec(packed["wdec"]), full_spec(packed["bdec"])],
        out_specs=row_spec(out_w),
        compiler_params=pltpu.CompilerParams(
            dimension_semantics=("parallel",),
            vmem_limit_bytes=48 * 1024 * 1024),
    )(betas, x_flat, y2, c2, eps,
      packed["wenc"], packed["wy_enc"], packed["benc"],
      packed["wdec"], packed["bdec"])

    w = out[:, :Dw]
    z = out[:, Dw:Dw + Dz]
    diag = out[:, Dw + Dz:Dw + Dz + _NDIAG_COLS]

    diagnostics = {n: diag[:, i] for i, n in enumerate(_DIAG_NAMES)}
    csvae_loss = jnp.mean(diag[:, _DIAG_NAMES.index("m")])
    log_qyz = diag[:, _NDIAG_CORE + 0]     # aux_y(z.detach()).log_prob(y)
    log_qc = diag[:, _NDIAG_CORE + 1]      # aux_c(w.detach()).log_prob(c)
    aux_y_loss = -byz * jnp.mean(log_qyz)
    aux_c_loss = -bc * jnp.mean(log_qc)

    # TODO(synk): the PyTorch `outputs` dict contains distribution objects
    # (px/pw/pz/qw/qz/qy); only the latent samples are representable as arrays.
    # TODO(synk): detach() semantics of the aux losses are not represented if
    # this forward pass is ever differentiated through.
    outputs = {"w": w, "z": z}
    return csvae_loss, aux_y_loss, aux_c_loss, diagnostics, outputs


if __name__ == "__main__":
    key = jax.random.PRNGKey(0)
    B, C, H, W = 2, 4, 16, 16
    Dw = Dz = 8
    D = C * H * W

    kx, ky, kc, kew, kez, kp = jax.random.split(key, 6)
    x = jax.random.normal(kx, (B, C, H, W), jnp.float32)
    y = (jax.random.uniform(ky, (B,)) > 0.5).astype(jnp.float32)
    c = (jax.random.uniform(kc, (B,)) > 0.5).astype(jnp.float32)
    eps_w = jax.random.normal(kew, (B, Dw), jnp.float32)
    eps_z = jax.random.normal(kez, (B, Dz), jnp.float32)
    params = init_params(kp, D, Dw, Dz)

    result = vi_adv_marg_forward(
        params, x, y, c, eps_w, eps_z,
        bx=1.0, bw=1.0, bz=1.0, bhw=10.0, bhz=10.0, byw=1.0, byz=1.0, bc=1.0)

    jax.block_until_ready(result)
    print("KERNEL_OK")
</pallas_src>

<mosaic_0001>
module attributes {stable_mosaic.version = 11 : i64} {
  func.func @_vi_adv_marg_kernel(%arg0: i32, %arg1: memref<6xf32, #tpu.memory_space<smem>>, %arg2: memref<8x1024xf32, #tpu.memory_space<vmem>>, %arg3: memref<8x1xf32, #tpu.memory_space<vmem>>, %arg4: memref<8x1xf32, #tpu.memory_space<vmem>>, %arg5: memref<8x16xf32, #tpu.memory_space<vmem>>, %arg6: memref<1024x32xbf16, #tpu.memory_space<vmem>>, %arg7: memref<1x32xf32, #tpu.memory_space<vmem>>, %arg8: memref<1x32xf32, #tpu.memory_space<vmem>>, %arg9: memref<16x1027xbf16, #tpu.memory_space<vmem>>, %arg10: memref<1x1027xf32, #tpu.memory_space<vmem>>, %arg11: memref<8x128xf32, #tpu.memory_space<vmem>>) attributes {dimension_semantics = [#tpu.dimension_semantics<parallel>], iteration_bounds = array<i64: 1>, scalar_prefetch = 0 : i64, scratch_operands = 0 : i64, tpu.core_type = #tpu.core_type<tc>, window_params = [{transform_indices = @transform_0, window_bounds = array<i64: 6>}, {transform_indices = @transform_1, window_bounds = array<i64: 8, 1024>}, {transform_indices = @transform_2, window_bounds = array<i64: 8, 1>}, {transform_indices = @transform_3, window_bounds = array<i64: 8, 1>}, {transform_indices = @transform_4, window_bounds = array<i64: 8, 16>}, {pipeline_mode = #tpu.pipeline_mode<synchronous>, transform_indices = @transform_5, window_bounds = array<i64: 1024, 32>}, {pipeline_mode = #tpu.pipeline_mode<synchronous>, transform_indices = @transform_6, window_bounds = array<i64: 1, 32>}, {pipeline_mode = #tpu.pipeline_mode<synchronous>, transform_indices = @transform_7, window_bounds = array<i64: 1, 32>}, {pipeline_mode = #tpu.pipeline_mode<synchronous>, transform_indices = @transform_8, window_bounds = array<i64: 16, 1027>}, {pipeline_mode = #tpu.pipeline_mode<synchronous>, transform_indices = @transform_9, window_bounds = array<i64: 1, 1027>}, {transform_indices = @transform_10, window_bounds = array<i64: 8, 128>}]} {
    %c0 = arith.constant 0 : index
    %c0_0 = arith.constant 0 : index
    %0 = vector.load %arg2[%c0, %c0_0] : memref<8x1024xf32, #tpu.memory_space<vmem>>, vector<8x1024xf32>
    %c0_1 = arith.constant 0 : index
    %c0_2 = arith.constant 0 : index
    %1 = vector.load %arg3[%c0_1, %c0_2] : memref<8x1xf32, #tpu.memory_space<vmem>>, vector<8x1xf32>
    %c0_3 = arith.constant 0 : index
    %c0_4 = arith.constant 0 : index
    %2 = vector.load %arg4[%c0_3, %c0_4] : memref<8x1xf32, #tpu.memory_space<vmem>>, vector<8x1xf32>
    %c0_5 = arith.constant 0 : index
    %c0_6 = arith.constant 0 : index
    %3 = vector.load %arg5[%c0_5, %c0_6] : memref<8x16xf32, #tpu.memory_space<vmem>>, vector<8x16xf32>
    %c0_7 = arith.constant 0 : index
    %4 = memref.load %arg1[%c0_7] : memref<6xf32, #tpu.memory_space<smem>>
    %c1 = arith.constant 1 : index
    %5 = memref.load %arg1[%c1] : memref<6xf32, #tpu.memory_space<smem>>
    %c2 = arith.constant 2 : index
    %6 = memref.load %arg1[%c2] : memref<6xf32, #tpu.memory_space<smem>>
    %c3 = arith.constant 3 : index
    %7 = memref.load %arg1[%c3] : memref<6xf32, #tpu.memory_space<smem>>
    %c4 = arith.constant 4 : index
    %8 = memref.load %arg1[%c4] : memref<6xf32, #tpu.memory_space<smem>>
    %c5 = arith.constant 5 : index
    %9 = memref.load %arg1[%c5] : memref<6xf32, #tpu.memory_space<smem>>
    %10 = arith.truncf %0 : vector<8x1024xf32> to vector<8x1024xbf16>
    %c0_8 = arith.constant 0 : index
    %c0_9 = arith.constant 0 : index
    %11 = vector.load %arg6[%c0_8, %c0_9] : memref<1024x32xbf16, #tpu.memory_space<vmem>>, vector<1024x32xbf16>
    %cst = arith.constant dense<0.000000e+00> : vector<8x32xf32>
    %12 = tpu.matmul %10, %11, %cst {dimension_numbers = #tpu.dot_dimension_numbers<[1], [0], [0], [1], [0, 0, 1, 1], [], []>} : vector<8x1024xbf16>, vector<1024x32xbf16>, vector<8x32xf32> -> vector<8x32xf32>
    %c0_10 = arith.constant 0 : index
    %c0_11 = arith.constant 0 : index
    %13 = vector.load %arg7[%c0_10, %c0_11] : memref<1x32xf32, #tpu.memory_space<vmem>>, vector<1x32xf32>
    %14 = vector.broadcast %1 : vector<8x1xf32> to vector<8x32xf32>
    %15 = vector.broadcast %13 : vector<1x32xf32> to vector<8x32xf32>
    %16 = arith.mulf %14, %15 : vector<8x32xf32>
    %17 = arith.addf %12, %16 : vector<8x32xf32>
    %c0_12 = arith.constant 0 : index
    %c0_13 = arith.constant 0 : index
    %18 = vector.load %arg8[%c0_12, %c0_13] : memref<1x32xf32, #tpu.memory_space<vmem>>, vector<1x32xf32>
    %19 = vector.broadcast %18 : vector<1x32xf32> to vector<8x32xf32>
    %20 = arith.addf %17, %19 : vector<8x32xf32>
    %21 = vector.extract_strided_slice %20 {offsets = [0, 0], sizes = [8, 16], strides = [1, 1]} : vector<8x32xf32> to vector<8x16xf32>
    %22 = vector.extract_strided_slice %20 {offsets = [0, 16], sizes = [8, 16], strides = [1, 1]} : vector<8x32xf32> to vector<8x16xf32>
    %23 = math.exp %22 : vector<8x16xf32>
    %24 = arith.mulf %23, %3 : vector<8x16xf32>
    %25 = arith.addf %21, %24 : vector<8x16xf32>
    %26 = vector.extract_strided_slice %25 {offsets = [0, 0], sizes = [8, 8], strides = [1, 1]} : vector<8x16xf32> to vector<8x8xf32>
    %27 = vector.extract_strided_slice %25 {offsets = [0, 8], sizes = [8, 8], strides = [1, 1]} : vector<8x16xf32> to vector<8x8xf32>
    %28 = arith.truncf %25 : vector<8x16xf32> to vector<8x16xbf16>
    %c0_14 = arith.constant 0 : index
    %c0_15 = arith.constant 0 : index
    %29 = vector.load %arg9[%c0_14, %c0_15] : memref<16x1027xbf16, #tpu.memory_space<vmem>>, vector<16x1027xbf16>
    %cst_16 = arith.constant dense<0.000000e+00> : vector<8x1027xf32>
    %30 = tpu.matmul %28, %29, %cst_16 {dimension_numbers = #tpu.dot_dimension_numbers<[1], [0], [0], [1], [0, 0, 1, 1], [], []>} : vector<8x16xbf16>, vector<16x1027xbf16>, vector<8x1027xf32> -> vector<8x1027xf32>
    %c0_17 = arith.constant 0 : index
    %c0_18 = arith.constant 0 : index
    %31 = vector.load %arg10[%c0_17, %c0_18] : memref<1x1027xf32, #tpu.memory_space<vmem>>, vector<1x1027xf32>
    %32 = vector.broadcast %31 : vector<1x1027xf32> to vector<8x1027xf32>
    %33 = arith.addf %30, %32 : vector<8x1027xf32>
    %34 = vector.extract_strided_slice %33 {offsets = [0, 0], sizes = [8, 1024], strides = [1, 1]} : vector<8x1027xf32> to vector<8x1024xf32>
    %35 = arith.subf %0, %34 : vector<8x1024xf32>
    %36 = arith.mulf %35, %35 : vector<8x1024xf32>
    %cst_19 = arith.constant dense<0.000000e+00> : vector<8xf32>
    %37 = vector.multi_reduction <add>, %36, %cst_19 [1] : vector<8x1024xf32> to vector<8xf32>
    %38 = vector.shape_cast %37 : vector<8xf32> to vector<8x1xf32>
    %cst_20 = arith.constant -5.000000e-01 : f32
    %39 = vector.broadcast %cst_20 : f32 to vector<8x1xf32>
    %40 = arith.mulf %39, %38 : vector<8x1xf32>
    %cst_21 = arith.constant 940.993041 : f32
    %41 = vector.broadcast %cst_21 : f32 to vector<8x1xf32>
    %42 = arith.subf %40, %41 : vector<8x1xf32>
    %43 = arith.mulf %26, %26 : vector<8x8xf32>
    %cst_22 = arith.constant dense<0.000000e+00> : vector<8xf32>
    %44 = vector.multi_reduction <add>, %43, %cst_22 [1] : vector<8x8xf32> to vector<8xf32>
    %45 = vector.shape_cast %44 : vector<8xf32> to vector<8x1xf32>
    %cst_23 = arith.constant -5.000000e-01 : f32
    %46 = vector.broadcast %cst_23 : f32 to vector<8x1xf32>
    %47 = arith.mulf %46, %45 : vector<8x1xf32>
    %cst_24 = arith.constant 7.35150814 : f32
    %48 = vector.broadcast %cst_24 : f32 to vector<8x1xf32>
    %49 = arith.subf %47, %48 : vector<8x1xf32>
    %50 = arith.mulf %27, %27 : vector<8x8xf32>
    %cst_25 = arith.constant dense<0.000000e+00> : vector<8xf32>
    %51 = vector.multi_reduction <add>, %50, %cst_25 [1] : vector<8x8xf32> to vector<8xf32>
    %52 = vector.shape_cast %51 : vector<8xf32> to vector<8x1xf32>
    %cst_26 = arith.constant -5.000000e-01 : f32
    %53 = vector.broadcast %cst_26 : f32 to vector<8x1xf32>
    %54 = arith.mulf %53, %52 : vector<8x1xf32>
    %cst_27 = arith.constant 7.35150814 : f32
    %55 = vector.broadcast %cst_27 : f32 to vector<8x1xf32>
    %56 = arith.subf %54, %55 : vector<8x1xf32>
    %57 = vector.extract_strided_slice %3 {offsets = [0, 0], sizes = [8, 8], strides = [1, 1]} : vector<8x16xf32> to vector<8x8xf32>
    %58 = vector.extract_strided_slice %3 {offsets = [0, 8], sizes = [8, 8], strides = [1, 1]} : vector<8x16xf32> to vector<8x8xf32>
    %59 = arith.mulf %57, %57 : vector<8x8xf32>
    %cst_28 = arith.constant dense<0.000000e+00> : vector<8xf32>
    %60 = vector.multi_reduction <add>, %59, %cst_28 [1] : vector<8x8xf32> to vector<8xf32>
    %61 = vector.shape_cast %60 : vector<8xf32> to vector<8x1xf32>
    %cst_29 = arith.constant -5.000000e-01 : f32
    %62 = vector.broadcast %cst_29 : f32 to vector<8x1xf32>
    %63 = arith.mulf %62, %61 : vector<8x1xf32>
    %64 = vector.extract_strided_slice %22 {offsets = [0, 0], sizes = [8, 8], strides = [1, 1]} : vector<8x16xf32> to vector<8x8xf32>
    %cst_30 = arith.constant dense<0.000000e+00> : vector<8xf32>
    %65 = vector.multi_reduction <add>, %64, %cst_30 [1] : vector<8x8xf32> to vector<8xf32>
    %66 = vector.shape_cast %65 : vector<8xf32> to vector<8x1xf32>
    %67 = arith.subf %63, %66 : vector<8x1xf32>
    %cst_31 = arith.constant 7.35150814 : f32
    %68 = vector.broadcast %cst_31 : f32 to vector<8x1xf32>
    %69 = arith.subf %67, %68 : vector<8x1xf32>
    %70 = arith.mulf %58, %58 : vector<8x8xf32>
    %cst_32 = arith.constant dense<0.000000e+00> : vector<8xf32>
    %71 = vector.multi_reduction <add>, %70, %cst_32 [1] : vector<8x8xf32> to vector<8xf32>
    %72 = vector.shape_cast %71 : vector<8xf32> to vector<8x1xf32>
    %cst_33 = arith.constant -5.000000e-01 : f32
    %73 = vector.broadcast %cst_33 : f32 to vector<8x1xf32>
    %74 = arith.mulf %73, %72 : vector<8x1xf32>
    %75 = vector.extract_strided_slice %22 {offsets = [0, 8], sizes = [8, 8], strides = [1, 1]} : vector<8x16xf32> to vector<8x8xf32>
    %cst_34 = arith.constant dense<0.000000e+00> : vector<8xf32>
    %76 = vector.multi_reduction <add>, %75, %cst_34 [1] : vector<8x8xf32> to vector<8xf32>
    %77 = vector.shape_cast %76 : vector<8xf32> to vector<8x1xf32>
    %78 = arith.subf %74, %77 : vector<8x1xf32>
    %cst_35 = arith.constant 7.35150814 : f32
    %79 = vector.broadcast %cst_35 : f32 to vector<8x1xf32>
    %80 = arith.subf %78, %79 : vector<8x1xf32>
    %81 = vector.extract_strided_slice %33 {offsets = [0, 1024], sizes = [8, 3], strides = [1, 1]} : vector<8x1027xf32> to vector<8x3xf32>
    %cst_36 = arith.constant 0.000000e+00 : f32
    %82 = vector.broadcast %cst_36 : f32 to vector<8x3xf32>
    %83 = arith.maximumf %81, %82 : vector<8x3xf32>
    %84 = vector.broadcast %cst_36 : f32 to vector<8x3xf32>
    %85 = arith.subf %81, %84 : vector<8x3xf32>
    %86 = arith.cmpf one, %85, %85 : vector<8x3xf32>
    %87 = vector.broadcast %cst_36 : f32 to vector<8x3xf32>
    %88 = arith.addf %81, %87 : vector<8x3xf32>
    %89 = math.absf %85 : vector<8x3xf32>
    %cst_37 = arith.constant 0.000000e+00 : f32
    %90 = vector.broadcast %cst_37 : f32 to vector<8x3xf32>
    %91 = arith.subf %90, %89 : vector<8x3xf32>
    %92 = math.exp %91 : vector<8x3xf32>
    %93 = math.log1p %92 : vector<8x3xf32>
    %94 = arith.addf %83, %93 : vector<8x3xf32>
    %95 = arith.select %86, %88, %94 : vector<8x3xi1>, vector<8x3xf32>
    %96 = arith.negf %81 : vector<8x3xf32>
    %97 = math.exp %96 : vector<8x3xf32>
    %cst_38 = arith.constant 1.000000e+00 : f32
    %98 = vector.broadcast %cst_38 : f32 to vector<8x3xf32>
    %99 = arith.addf %98, %97 : vector<8x3xf32>
    %100 = arith.divf %98, %99 : vector<8x3xf32>
    %101 = arith.mulf %81, %100 : vector<8x3xf32>
    %102 = arith.subf %95, %101 : vector<8x3xf32>
    %103 = vector.extract_strided_slice %81 {offsets = [0, 0], sizes = [8, 1], strides = [1, 1]} : vector<8x3xf32> to vector<8x1xf32>
    %104 = arith.mulf %1, %103 : vector<8x1xf32>
    %105 = vector.extract_strided_slice %95 {offsets = [0, 0], sizes = [8, 1], strides = [1, 1]} : vector<8x3xf32> to vector<8x1xf32>
    %106 = arith.subf %104, %105 : vector<8x1xf32>
    %107 = vector.extract_strided_slice %102 {offsets = [0, 1], sizes = [8, 1], strides = [1, 1]} : vector<8x3xf32> to vector<8x1xf32>
    %108 = vector.extract_strided_slice %102 {offsets = [0, 2], sizes = [8, 1], strides = [1, 1]} : vector<8x3xf32> to vector<8x1xf32>
    %109 = vector.extract_strided_slice %81 {offsets = [0, 1], sizes = [8, 1], strides = [1, 1]} : vector<8x3xf32> to vector<8x1xf32>
    %110 = arith.mulf %1, %109 : vector<8x1xf32>
    %111 = vector.extract_strided_slice %95 {offsets = [0, 1], sizes = [8, 1], strides = [1, 1]} : vector<8x3xf32> to vector<8x1xf32>
    %112 = arith.subf %110, %111 : vector<8x1xf32>
    %113 = vector.extract_strided_slice %81 {offsets = [0, 2], sizes = [8, 1], strides = [1, 1]} : vector<8x3xf32> to vector<8x1xf32>
    %114 = arith.mulf %2, %113 : vector<8x1xf32>
    %115 = vector.extract_strided_slice %95 {offsets = [0, 2], sizes = [8, 1], strides = [1, 1]} : vector<8x3xf32> to vector<8x1xf32>
    %116 = arith.subf %114, %115 : vector<8x1xf32>
    %117 = math.exp %112 : vector<8x1xf32>
    %118 = math.exp %116 : vector<8x1xf32>
    %119 = arith.subf %69, %49 : vector<8x1xf32>
    %120 = arith.subf %80, %56 : vector<8x1xf32>
    %cst_39 = arith.constant 0.000000e+00 : f32
    %121 = arith.subf %cst_39, %4 : f32
    %122 = vector.broadcast %121 : f32 to vector<8x1xf32>
    %123 = arith.mulf %122, %42 : vector<8x1xf32>
    %124 = vector.broadcast %5 : f32 to vector<8x1xf32>
    %125 = arith.mulf %124, %119 : vector<8x1xf32>
    %126 = arith.addf %123, %125 : vector<8x1xf32>
    %127 = vector.broadcast %6 : f32 to vector<8x1xf32>
    %128 = arith.mulf %127, %120 : vector<8x1xf32>
    %129 = arith.addf %126, %128 : vector<8x1xf32>
    %130 = vector.broadcast %9 : f32 to vector<8x1xf32>
    %131 = arith.mulf %130, %106 : vector<8x1xf32>
    %132 = arith.subf %129, %131 : vector<8x1xf32>
    %133 = vector.broadcast %8 : f32 to vector<8x1xf32>
    %134 = arith.mulf %133, %107 : vector<8x1xf32>
    %135 = arith.subf %132, %134 : vector<8x1xf32>
    %136 = vector.broadcast %7 : f32 to vector<8x1xf32>
    %137 = arith.mulf %136, %108 : vector<8x1xf32>
    %138 = arith.subf %135, %137 : vector<8x1xf32>
    %cst_40 = arith.constant 0.000000e+00 : f32
    %139 = vector.broadcast %cst_40 : f32 to vector<8x100xf32>
    %140 = tpu.concatenate %26, %27, %132, %42, %119, %120, %108, %107, %117, %118, %138, %106, %112, %116, %139 in 1 : vector<8x8xf32>, vector<8x8xf32>, vector<8x1xf32>, vector<8x1xf32>, vector<8x1xf32>, vector<8x1xf32>, vector<8x1xf32>, vector<8x1xf32>, vector<8x1xf32>, vector<8x1xf32>, vector<8x1xf32>, vector<8x1xf32>, vector<8x1xf32>, vector<8x1xf32>, vector<8x100xf32> -> vector<8x128xf32>
    %c0_41 = arith.constant 0 : index
    %c0_42 = arith.constant 0 : index
    %141 = vector.load %arg11[%c0_41, %c0_42] : memref<8x128xf32, #tpu.memory_space<vmem>>, vector<8x128xf32>
    tpu.vector_store %arg11[%c0_41, %c0_42], %140 {strides = array<i32>} : memref<8x128xf32, #tpu.memory_space<vmem>>, vector<8x128xf32>,
    return
  }
  func.func @transform_0(%arg0: i32) -> i32 {
    %c0_i32 = arith.constant 0 : i32
    %c0_i32_0 = arith.constant 0 : i32
    return %c0_i32 : i32
  }
  func.func @transform_1(%arg0: i32) -> (i32, i32) {
    %c0_i32 = arith.constant 0 : i32
    %c0_i32_0 = arith.constant 0 : i32
    return %arg0, %c0_i32 : i32, i32
  }
  func.func @transform_2(%arg0: i32) -> (i32, i32) {
    %c0_i32 = arith.constant 0 : i32
    %c0_i32_0 = arith.constant 0 : i32
    return %arg0, %c0_i32 : i32, i32
  }
  func.func @transform_3(%arg0: i32) -> (i32, i32) {
    %c0_i32 = arith.constant 0 : i32
    %c0_i32_0 = arith.constant 0 : i32
    return %arg0, %c0_i32 : i32, i32
  }
  func.func @transform_4(%arg0: i32) -> (i32, i32) {
    %c0_i32 = arith.constant 0 : i32
    %c0_i32_0 = arith.constant 0 : i32
    return %arg0, %c0_i32 : i32, i32
  }
  func.func @transform_5(%arg0: i32) -> (i32, i32) {
    %c0_i32 = arith.constant 0 : i32
    %c0_i32_0 = arith.constant 0 : i32
    %c0_i32_1 = arith.constant 0 : i32
    return %c0_i32, %c0_i32_0 : i32, i32
  }
  func.func @transform_6(%arg0: i32) -> (i32, i32) {
    %c0_i32 = arith.constant 0 : i32
    %c0_i32_0 = arith.constant 0 : i32
    %c0_i32_1 = arith.constant 0 : i32
    return %c0_i32, %c0_i32_0 : i32, i32
  }
  func.func @transform_7(%arg0: i32) -> (i32, i32) {
    %c0_i32 = arith.constant 0 : i32
    %c0_i32_0 = arith.constant 0 : i32
    %c0_i32_1 = arith.constant 0 : i32
    return %c0_i32, %c0_i32_0 : i32, i32
  }
  func.func @transform_8(%arg0: i32) -> (i32, i32) {
    %c0_i32 = arith.constant 0 : i32
    %c0_i32_0 = arith.constant 0 : i32
    %c0_i32_1 = arith.constant 0 : i32
    return %c0_i32, %c0_i32_0 : i32, i32
  }
  func.func @transform_9(%arg0: i32) -> (i32, i32) {
    %c0_i32 = arith.constant 0 : i32
    %c0_i32_0 = arith.constant 0 : i32
    %c0_i32_1 = arith.constant 0 : i32
    return %c0_i32, %c0_i32_0 : i32, i32
  }
  func.func @transform_10(%arg0: i32) -> (i32, i32) {
    %c0_i32 = arith.constant 0 : i32
    %c0_i32_0 = arith.constant 0 : i32
    return %arg0, %c0_i32 : i32, i32
  }
}

</mosaic_0001>

<bundles_post_ra>
// kernel: tpu_custom_call.1
= control target key start
LH: loop header
LB: loop body
LE: loop exit
PB: predicated region body
PF: predicated region fallthrough
CT: control target
= control target key end

     0   :  { %15 = vsyncpa [#allocation4], 0  ;;  %s2427_s0 = inlined_call_operand.vmem [shape: f32[6], index: 0, kind: input, shape index: {}]   ;;  %s2428_s1 = inlined_call_operand.vmem [shape: f32[2,1024], index: 1, kind: input, shape index: {}]   ;;  %s2429_s2 = inlined_call_operand.vmem [shape: f32[2,1], index: 2, kind: input, shape index: {}]   ;;  %s2430_s3 = inlined_call_operand.vmem [shape: f32[2,1], index: 3, kind: input, shape index: {}]   ;;  %s2431_s4 = inlined_call_operand.vmem [shape: f32[2,16], index: 4, kind: input, shape index: {}]   ;;  %s2432_s5 = inlined_call_operand.vmem [shape: bf16[1024,32], index: 5, kind: input, shape index: {}]   ;;  %s2433_s6 = inlined_call_operand.vmem [shape: f32[1,32], index: 6, kind: input, shape index: {}]   ;;  %s2434_s7 = inlined_call_operand.vmem [shape: f32[1,32], index: 7, kind: input, shape index: {}]   ;;  %s2435_s8 = inlined_call_operand.vmem [shape: bf16[16,1027], index: 8, kind: input, shape index: {}]   ;;  %s2436_s9 = inlined_call_operand.vmem [shape: f32[1,1027], index: 9, kind: input, shape index: {}]   ;;  %s2437_s10 = inlined_call_operand.hbm [shape: f32[2,128], index: 10, kind: output, shape index: {}]  }
   0x1   :  { %16 = vsyncpa [#allocation3], 0  ;;  %s23_s15 = sshll.u32 %s2427_s0, 4  ;;  %s24_s15 = int_to_ptr.vmem [resolvable:$true] %s23_s15 }
   0x2   :  { %s1897_s16 = scalar_lea.vmem %s24_s15, 16  ;;  %p1902_p1 = scmp.lt.s32.totalorder %s24_s15, %s24_s15 }
   0x3   :  { %p1898_p0 = scmp.ne.s32.totalorder %s24_s15, %s1897_s16  ;;  %p1903_p2 = scmp.lt.s32.totalorder %s1897_s16, %s1897_s16 }
   0x5   :  { %p1904_p3 = por %p1903_p2, %p1902_p1 }
   0x7   :  { %p1905_p4 = pnand %p1904_p3, %p1898_p0 }
   0x9   :  { %1908 = shalt.err (!%p1905_p4)
}
   0xa   :  { %s1935_s17 = smov [#allocation2]  }
   0xb   :  { %26 = dma.vmem_to_smem %s24_s15, 16, %s1935_s17, [#allocation4]  }
   0xc   :  { %1931 = dma.done.wait [#allocation4], 16  }
   0xd   :  { %1932 = vsyncadd [#allocation4], 4294967280 }
   0xe   :  { %48 = sfence }
   0xf   :  { %v1798_v0 = vld [vmem:[%s2432_s5 + $0x40] sm:$0xff]   ;;  %v1936_v2 = vmov 0   ;;  %v1802_v5 = vld [vmem:[%s2432_s5 + $0x48] sm:$0xff]   ;;  %v1806_v9 = vld [vmem:[%s2432_s5 + $0x50] sm:$0xff]   ;;  %v82_v31 = vlaneseq  ;;  %v1937_v38 = vmov 1983009808  }
  0x10   :  { %v1799_v1 = vld [vmem:[%s2432_s5 + $0xc0] sm:$0xff]   ;;  %1797 = vset.pattern.permute.xlu0 %v1936_v2  ;;  %1679 = vmatprep.subr.bf16.mxu0 %v1798_v0  ;;  %v1803_v6 = vld [vmem:[%s2432_s5 + $0xc8] sm:$0xff]   ;;  %v1807_v10 = vld [vmem:[%s2432_s5 + $0xd0] sm:$0xff]   ;;  %v80_v39 = vunpack.c.l.s4 %v1937_v38  ;;  %s1938_s17 = smov 16   ;;  %s1940_s23 = smov 104   ;;  %vm974_vm0 = vcmask 130048  }
  0x11   :  { %v1800_v3 = vld [vmem:[%s2432_s5] sm:$0xff]   ;;  %1701 = vmatprep.subr.bf16.mxu1 %v1799_v1  ;;  %v1804_v7 = vld [vmem:[%s2432_s5 + $0x8] sm:$0xff]   ;;  %v1808_v11 = vld [vmem:[%s2432_s5 + $0x10] sm:$0xff]   ;;  %v2132_v40 = vshrl.u32 %v82_v31, 7  ;;  %s1941_s11 = smov 112   ;;  %vm1386_vm1 = vcmask 64512  }
  0x12   :  { %v1801_v4 = vld [vmem:[%s2432_s5 + $0x80] sm:$0xff]   ;;  %1680 = vmatpush3.bf16.msra.mxu0 %v1800_v3  ;;  %v1805_v8 = vld [vmem:[%s2432_s5 + $0x88] sm:$0xff]   ;;  %v1809_v12 = vld [vmem:[%s2432_s5 + $0x90] sm:$0xff]   ;;  %v81_v44 = vunpack.c.0.s8 %v80_v39  ;;  %vm1943_vm2 = vmmov 0   ;;  %s1945_s18 = smov 127   ;;  %s1589_s19 = sld [smem:[#allocation2 + $0x3]] }
  0x13   :  { %1702 = vmatpush3.bf16.msra.mxu1 %v1801_v4  ;;  %1681 = vmatprep.subr.bf16.mxu0 %v1802_v5  ;;  %v1810_v13 = vld [vmem:[%s2432_s5 + $0x58] sm:$0xff]   ;;  %v1814_v17 = vld [vmem:[%s2432_s5 + $0x60] sm:$0xff]   ;;  %v1818_v21 = vld [vmem:[%s2432_s5 + $0x68] sm:$0xff]   ;;  %s1590_s20 = sld [smem:[#allocation2 + $0x4]]  ;;  %s1946_s21 = smov 18   ;;  %vm1545_vm5 = vcmask 138240  }
  0x14   :  { %1703 = vmatprep.subr.bf16.mxu1 %v1803_v6  ;;  %v1811_v14 = vld [vmem:[%s2432_s5 + $0xd8] sm:$0xff]   ;;  %v1815_v18 = vld [vmem:[%s2432_s5 + $0xe0] sm:$0xff]   ;;  %v1819_v22 = vld [vmem:[%s2432_s5 + $0xe8] sm:$0xff]   ;;  %v2149_v48 = vsub.s32 %v81_v44, %v2132_v40  ;;  %s61_s0 = sld [smem:[#allocation2]]  ;;  %s1948_s24 = smov 22   ;;  %vm1547_vm6 = vcmask 146432  }
  0x15   :  { %v1812_v15 = vld [vmem:[%s2432_s5 + $0x18] sm:$0xff]   ;;  %v1816_v19 = vld [vmem:[%s2432_s5 + $0x20] sm:$0xff]   ;;  %v1820_v23 = vld [vmem:[%s2432_s5 + $0x28] sm:$0xff]   ;;  %s1587_s25 = sld [smem:[#allocation2 + $0x1]]  ;;  %s1588_s26 = sld [smem:[#allocation2 + $0x2]]  ;;  %vm1549_vm7 = vcmask 154624  }
  0x16   :  { %1682 = vmatpush3.bf16.msra.mxu0 %v1804_v7  ;;  %v1813_v16 = vld [vmem:[%s2432_s5 + $0x98] sm:$0xff]   ;;  %v1817_v20 = vld [vmem:[%s2432_s5 + $0xa0] sm:$0xff]   ;;  %v1821_v24 = vld [vmem:[%s2432_s5 + $0xa8] sm:$0xff]   ;;  %s1591_s28 = sld [smem:[#allocation2 + $0x5]]  ;;  %s1950_s29 = smov 24   ;;  %vm1551_vm8 = vcmask 162816  }
  0x17   :  { %1704 = vmatpush3.bf16.msra.mxu1 %v1805_v8  ;;  %1683 = vmatprep.subr.bf16.mxu0 %v1806_v9  ;;  %v1822_v25 = vld [vmem:[%s2432_s5 + $0x70] sm:$0xff]   ;;  %v1826_v29 = vld [vmem:[%s2432_s5 + $0x78] sm:$0xff]   ;;  %v2115_v34 = vld [vmem:[%s2428_s1] sm:$0xff]  ;;  %s1952_s30 = smov 26   ;;  %vm1553_vm9 = vcmask 171008   ;;  %vm1555_vm10 = vcmask 179200  }
  0x18   :  { %1705 = vmatprep.subr.bf16.mxu1 %v1807_v10  ;;  %v1823_v26 = vld [vmem:[%s2432_s5 + $0xf0] sm:$0xff]   ;;  %v1827_v30 = vld [vmem:[%s2432_s5 + $0xf8] sm:$0xff]   ;;  %v2125_v36 = vld [vmem:[%s2428_s1 + $0x20] sm:$0xff]  ;;  %vm1557_vm11 = vcmask 187392   ;;  %vm1559_vm12 = vcmask 195584   ;;  %vm1561_vm13 = vcmask 203776  }
  0x19   :  { %v1824_v27 = vld [vmem:[%s2432_s5 + $0x30] sm:$0xff]   ;;  %v1828_v32 = vld [vmem:[%s2432_s5 + $0x38] sm:$0xff]   ;;  %v1834_v42 = vld [vmem:[%s2432_s5 + $0x140] sm:$0xff]   ;;  %vm1563_vm14 = vcmask 211968   ;;  %vm1565_vm15 = vcmask 220160  }
  0x1a   :  { %1684 = vmatpush3.bf16.msra.mxu0 %v1808_v11  ;;  %v1825_v28 = vld [vmem:[%s2432_s5 + $0xb0] sm:$0xff]   ;;  %v1829_v33 = vld [vmem:[%s2432_s5 + $0xb8] sm:$0xff]   ;;  %v1835_v47 = vld [vmem:[%s2432_s5 + $0x1c0] sm:$0xff]   ;;  %s1483_s27 = ssub.f32 0.0, %s61_s0 }
  0x1b   :  { %1706 = vmatpush3.bf16.msra.mxu1 %v1809_v12  ;;  %1685 = vmatprep.subr.bf16.mxu0 %v1810_v13  ;;  %v2120_v35 = vld [vmem:[%s2428_s1 + $0x10] sm:$0xff]  ;;  %v1836_v57 = vld [vmem:[%s2432_s5 + $0x100] sm:$0xff]   ;;  %v1838_v63 = vld [vmem:[%s2432_s5 + $0x148] sm:$0xff]  }
  0x1c   :  { %1707 = vmatprep.subr.bf16.mxu1 %v1811_v14  ;;  %v2130_v37 = vld [vmem:[%s2428_s1 + $0x30] sm:$0xff]  ;;  %v75_v41 = vcombine.low %v2115_v34, %v2120_v35  ;;  %v76_v45 = vcombine.high %v2115_v34, %v2120_v35  ;;  %v1837_v58 = vld [vmem:[%s2432_s5 + $0x180] sm:$0xff]   ;;  %v1839_v0 = vld [vmem:[%s2432_s5 + $0x1c8] sm:$0xff]  }
  0x1d   :  { %v77_v43 = vcombine.low %v2125_v36, %v2130_v37  ;;  %v78_v46 = vcombine.high %v2125_v36, %v2130_v37  ;;  %v1840_v1 = vld [vmem:[%s2432_s5 + $0x108] sm:$0xff]   ;;  %v1842_v4 = vld [vmem:[%s2432_s5 + $0x150] sm:$0xff]   ;;  %v1846_v8 = vld [vmem:[%s2432_s5 + $0x158] sm:$0xff]  }
  0x1e   :  { %1686 = vmatpush3.bf16.msra.mxu0 %v1812_v15  ;;  %v85_v49 = vrot.slane %v75_v41, %v2149_v48  ;;  %v92_v51 = vrot.slane %v76_v45, %v2149_v48  ;;  %v1841_v3 = vld [vmem:[%s2432_s5 + $0x188] sm:$0xff]   ;;  %v1843_v5 = vld [vmem:[%s2432_s5 + $0x1d0] sm:$0xff]   ;;  %v1847_v9 = vld [vmem:[%s2432_s5 + $0x1d8] sm:$0xff]  }
  0x1f   :  { %1708 = vmatpush3.bf16.msra.mxu1 %v1813_v16  ;;  %1687 = vmatprep.subr.bf16.mxu0 %v1814_v17  ;;  %v99_v50 = vrot.slane %v77_v43, %v2149_v48  ;;  %v106_v52 = vrot.slane %v78_v46, %v2149_v48  ;;  %v1844_v6 = vld [vmem:[%s2432_s5 + $0x110] sm:$0xff]   ;;  %v1848_v10 = vld [vmem:[%s2432_s5 + $0x118] sm:$0xff]   ;;  %v1850_v12 = vld [vmem:[%s2432_s5 + $0x160] sm:$0xff]  }
  0x20   :  { %1709 = vmatprep.subr.bf16.mxu1 %v1815_v18  ;;  %v1845_v7 = vld [vmem:[%s2432_s5 + $0x190] sm:$0xff]   ;;  %v1849_v11 = vld [vmem:[%s2432_s5 + $0x198] sm:$0xff]   ;;  %v1851_v13 = vld [vmem:[%s2432_s5 + $0x1e0] sm:$0xff]  }
  0x21   :  { %v108_v53 = vcombine.high %v85_v49, %v99_v50  ;;  %v110_v54 = vcombine.high %v92_v51, %v106_v52  ;;  %v107_v55 = vcombine.low %v85_v49, %v99_v50  ;;  %v109_v56 = vcombine.low %v92_v51, %v106_v52  ;;  %v1852_v14 = vld [vmem:[%s2432_s5 + $0x120] sm:$0xff]   ;;  %v1854_v16 = vld [vmem:[%s2432_s5 + $0x168] sm:$0xff]   ;;  %v1864_v45 = vld [vmem:[%s2432_s5 + $0x138] sm:$0xff]  }
  0x22   :  { %1688 = vmatpush3.bf16.msra.mxu0 %v1816_v19  ;;  %v1853_v15 = vld [vmem:[%s2432_s5 + $0x1a0] sm:$0xff]   ;;  %v1855_v17 = vld [vmem:[%s2432_s5 + $0x1e8] sm:$0xff]   ;;  %v1865_v46 = vld [vmem:[%s2432_s5 + $0x1b8] sm:$0xff]  }
  0x23   :  { %1710 = vmatpush3.bf16.msra.mxu1 %v1817_v20  ;;  %1689 = vmatprep.subr.bf16.mxu0 %v1818_v21  ;;  %v156_v59 = vpack.c.bf16 %v108_v53, %v108_v53  ;;  %v158_v60 = vpack.c.bf16 %v110_v54, %v110_v54  ;;  %v155_v61 = vpack.c.bf16 %v107_v55, %v107_v55  ;;  %v1856_v18 = vld [vmem:[%s2432_s5 + $0x128] sm:$0xff]   ;;  %v1858_v20 = vld [vmem:[%s2432_s5 + $0x170] sm:$0xff]   ;;  %v2263_v31 = vld [vmem:[%s2429_s2] sm:$0xff] }
  0x24   :  { %1711 = vmatprep.subr.bf16.mxu1 %v1819_v22  ;;  %v157_v62 = vpack.c.bf16 %v109_v56, %v109_v56  ;;  %v1857_v19 = vld [vmem:[%s2432_s5 + $0x1a8] sm:$0xff]   ;;  %v1859_v21 = vld [vmem:[%s2432_s5 + $0x1f0] sm:$0xff]   ;;  %294 = vperm.xlu0 %1797, %v2263_v31   ;;  %v60_v44 = vld [vmem:[%s2431_s4] sm:$0xff]  ;;  %s1939_s4 = smov 120  }
  0x25   :  { %720 = vmatprep.mubr.bf16.mxu0 %v156_v59  ;;  %760 = vmatprep.mubr.bf16.mxu1 %v158_v60  ;;  %v1860_v22 = vld [vmem:[%s2432_s5 + $0x130] sm:$0xff]   ;;  %v2289_v56 = vmul.f32 %v60_v44, %v60_v44 }
  0x26   :  { %1690 = vmatpush3.bf16.msra.mxu0 %v1820_v23  ;;  %v1861_v23 = vld [vmem:[%s2432_s5 + $0x1b0] sm:$0xff]  }
  0x27   :  { %1712 = vmatpush3.bf16.msra.mxu1 %v1821_v24  ;;  %1691 = vmatprep.subr.bf16.mxu0 %v1822_v25  ;;  %v2236_v24 = vld [vmem:[%s2428_s1 + $0x8] sm:$0xff]  ;;  %v2241_v25 = vld [vmem:[%s2428_s1 + $0x18] sm:$0xff] }
  0x28   :  { %1713 = vmatprep.subr.bf16.mxu1 %v1823_v26  ;;  %v1862_v26 = vld [vmem:[%s2432_s5 + $0x178] sm:$0xff]   ;;  %859 = vrot.lane.b32.xlu0 %v60_v44, %s1938_s17 }
  0x2a   :  { %1692 = vmatpush3.bf16.msra.mxu0 %v1824_v27  ;;  %v2249_v27 = vld [vmem:[%s2428_s1 + $0x28] sm:$0xff] }
  0x2b   :  { %1714 = vmatpush3.bf16.msra.mxu1 %v1825_v28  ;;  %1693 = vmatprep.subr.bf16.mxu0 %v1826_v29  ;;  %v2254_v28 = vld [vmem:[%s2428_s1 + $0x38] sm:$0xff]  ;;  %v111_v29 = vcombine.low %v2236_v24, %v2241_v25 }
  0x2c   :  { %1715 = vmatprep.subr.bf16.mxu1 %v1827_v30  ;;  %v112_v30 = vcombine.high %v2236_v24, %v2241_v25  ;;  %v114_v38 = vcombine.high %v2249_v27, %v2254_v28  ;;  %1416 = vrot.lane.b32.xlu0 %v2289_v56, %s1939_s4 }
  0x2d   :  { %v121_v39 = vrot.slane %v111_v29, %v2149_v48 }
  0x2e   :  { %1694 = vmatpush3.bf16.msra.mxu0 %v1828_v32  ;;  %v1863_v32 = vld [vmem:[%s2432_s5 + $0x1f8] sm:$0xff]   ;;  %v128_v41 = vrot.slane %v112_v30, %v2149_v48  ;;  %v142_v43 = vrot.slane %v114_v38, %v2149_v48  ;;  %v1875_v30 = vld [vmem:[%s2435_s8 + $0xc] ss:$36 sps:$4 sm:$0xff]  }
  0x2f   :  { %1716 = vmatpush3.bf16.msra.mxu1 %v1829_v33  ;;  %1723 = vmatprep.subr.bf16.mxu0 %v1834_v42  ;;  %v113_v33 = vcombine.low %v2249_v27, %v2254_v28  ;;  %v1881_v38 = vld [vmem:[%s2435_s8 + $0x1c] ss:$36 sps:$4 sm:$0xff]  }
  0x30   :  { %1745 = vmatprep.subr.bf16.mxu1 %v1835_v47  ;;  %v146_v49 = vcombine.high %v128_v41, %v142_v43  ;;  %v145_v51 = vcombine.low %v128_v41, %v142_v43 }
  0x31   :  { %721 = vmatmul.mubr.bf16.vlgmr.msra.gmra.mrb[0].mxu0 %v155_v61  ;;  %v135_v42 = vrot.slane %v113_v33, %v2149_v48  ;;  %v1878_v33 = vld [vmem:[%s2435_s8 + $0x14] ss:$36 sps:$4 sm:$0xff]  }
  0x32   :  { %761 = vmatmul.mubr.bf16.vlgmr.msra.gmra.mrb[0].mxu1 %v157_v62  ;;  %1724 = vmatpush3.bf16.msra.mxu0 %v1836_v57  ;;  %v162_v53 = vpack.c.bf16 %v146_v49, %v146_v49  ;;  %v161_v55 = vpack.c.bf16 %v145_v51, %v145_v51  ;;  %v1592_v57 = vld [vmem:[%s2433_s6] ss:$0 sm:$0xff]  ;;  %s1947_s6 = smov 20  }
  0x33   :  { %1746 = vmatpush3.bf16.msra.mxu1 %v1837_v58  ;;  %1725 = vmatprep.subr.bf16.mxu0 %v1838_v63  ;;  %v144_v47 = vcombine.high %v121_v39, %v135_v42  ;;  %v143_v50 = vcombine.low %v121_v39, %v135_v42 }
  0x34   :  { %1747 = vmatprep.subr.bf16.mxu1 %v1839_v0  ;;  %840 = vmatprep.mubr.bf16.mxu1 %v162_v53 }
  0x35   :  { %v160_v52 = vpack.c.bf16 %v144_v47, %v144_v47  ;;  %v159_v54 = vpack.c.bf16 %v143_v50, %v143_v50  ;;  %v1879_v50 = vld [vmem:[%s2435_s8 + $0x18] ss:$36 sps:$4 sm:$0xff]  }
  0x36   :  { %1726 = vmatpush3.bf16.msra.mxu0 %v1840_v1 }
  0x37   :  { %1748 = vmatpush3.bf16.msra.mxu1 %v1841_v3  ;;  %1727 = vmatprep.subr.bf16.mxu0 %v1842_v4 }
  0x38   :  { %1749 = vmatprep.subr.bf16.mxu1 %v1843_v5  ;;  %800 = vmatprep.mubr.bf16.mxu0 %v160_v52 }
  0x3a   :  { %1728 = vmatpush3.bf16.msra.mxu0 %v1844_v6 }
  0x3b   :  { %1750 = vmatpush3.bf16.msra.mxu1 %v1845_v7  ;;  %1729 = vmatprep.subr.bf16.mxu0 %v1846_v8 }
  0x3c   :  { %1751 = vmatprep.subr.bf16.mxu1 %v1847_v9  ;;  %v1870_v9 = vld [vmem:[%s2435_s8] ss:$36 sps:$4 sm:$0xff]  }
  0x3e   :  { %1730 = vmatpush3.bf16.msra.mxu0 %v1848_v10  ;;  %v1872_v10 = vld [vmem:[%s2435_s8 + $0x4] ss:$36 sps:$4 sm:$0xff]  }
  0x3f   :  { %1752 = vmatpush3.bf16.msra.mxu1 %v1849_v11  ;;  %1731 = vmatprep.subr.bf16.mxu0 %v1850_v12 }
  0x40   :  { %1753 = vmatprep.subr.bf16.mxu1 %v1851_v13 }
  0x42   :  { %1732 = vmatpush3.bf16.msra.mxu0 %v1852_v14 }
  0x43   :  { %1754 = vmatpush3.bf16.msra.mxu1 %v1853_v15  ;;  %1733 = vmatprep.subr.bf16.mxu0 %v1854_v16 }
  0x44   :  { %1755 = vmatprep.subr.bf16.mxu1 %v1855_v17 }
  0x46   :  { %1734 = vmatpush3.bf16.msra.mxu0 %v1856_v18 }
  0x47   :  { %1756 = vmatpush3.bf16.msra.mxu1 %v1857_v19  ;;  %1735 = vmatprep.subr.bf16.mxu0 %v1858_v20 }
  0x48   :  { %1757 = vmatprep.subr.bf16.mxu1 %v1859_v21 }
  0x4a   :  { %1736 = vmatpush3.bf16.msra.mxu0 %v1860_v22  ;;  %v1657_v22 = vld [vmem:[%s2434_s7] ss:$0 sm:$0xff]  ;;  %s1951_s7 = smov 25  }
  0x4b   :  { %1758 = vmatpush3.bf16.msra.mxu1 %v1861_v23  ;;  %1737 = vmatprep.subr.bf16.mxu0 %v1862_v26 }
  0x4c   :  { %1759 = vmatprep.subr.bf16.mxu1 %v1863_v32  ;;  %v1873_v32 = vld [vmem:[%s2435_s8 + $0x8] ss:$36 sps:$4 sm:$0xff]  }
  0x4e   :  { %1738 = vmatpush3.bf16.msra.mxu0 %v1864_v45 }
  0x4f   :  { %1760 = vmatpush3.bf16.msra.mxu1 %v1865_v46  ;;  %978 = vmatprep.subr.bf16.mxu0 %v1872_v10  ;;  %v1876_v46 = vld [vmem:[%s2435_s8 + $0x10] ss:$36 sps:$4 sm:$0xff]  }
  0x50   :  { %1019 = vmatprep.subr.bf16.mxu1 %v1875_v30 }
  0x51   :  { %801 = vmatmul.mubr.bf16.vlgmr.msra.gmra.mrb[4].mxu0 %v159_v54  ;;  %v1942_v54 = vmov 0.0  }
  0x52   :  { %841 = vmatmul.mubr.bf16.vlgmr.msra.gmra.mrb[4].mxu1 %v161_v55  ;;  %1010 = vmatprep.mubr.bf16.mxu0 %v1936_v2 }
  0x53   :  { %1051 = vmatprep.mubr.bf16.mxu1 %v1936_v2  ;;  %979 = vmatpush1.bf16.msra.mxu0 %v1870_v9 }
  0x54   :  { %1020 = vmatpush1.bf16.msra.mxu1 %v1873_v32  ;;  %1060 = vmatprep.subr.bf16.mxu0 %v1878_v33 }
  0x55   :  { %1101 = vmatprep.subr.bf16.mxu1 %v1881_v38 }
  0xa3   :  { %v295_v58 = vpop.permute.xlu0 %294 }
  0xa4   :  { %v303_v61 = vmul.f32 %v1592_v57, %v295_v58  ;;  %v1882_v57 = vld [vmem:[%s2435_s8 + $0x20] ss:$36 sps:$4 sm:$0xff]  }
  0xa7   :  { %v860_v39 = vpop.permute.xlu0 %859 }
  0xab   :  { %v1417_v44 = vpop.permute.xlu0 %1416 }
 0x104   :  { %v1695_v59 = vpop.f32.mrb[0].mxu0 }
 0x105   :  { %v1717_v60 = vpop.f32.mrb[0].mxu1  ;;  %v1696_v62 = vpop.f32.mrb[1].mxu0 }
 0x106   :  { %v1718_v63 = vpop.f32.mrb[1].mxu1  ;;  %v1697_v0 = vadd.f32 %v1696_v62, %v1695_v59  ;;  %v1698_v3 = vpop.f32.mrb[2].mxu0  ;;  %v1419_v59 = vsel %vm1386_vm1, %v1417_v44, 0.0  ;;  %v885_v62 = vsub.s32 0, %v2132_v40 }
 0x107   :  { %v1719_v1 = vadd.f32 %v1718_v63, %v1717_v60  ;;  %v1720_v4 = vpop.f32.mrb[2].mxu1  ;;  %v1699_v5 = vpop.f32.mrb[3].mxu0  ;;  %v879_v63 = vld [vmem:[%s2436_s9] sm:$0xff] }
 0x108   :  { %v1721_v6 = vpop.f32.mrb[3].mxu1  ;;  %v723_v7 = vadd.f32 %v1697_v0, %v303_v61  ;;  %v893_v0 = vsub.s32 2, %v2132_v40  ;;  %v886_v3 = vrot.slane %v879_v63, %v885_v62 }
 0x10a   :  { %v763_v8 = vadd.f32 %v1719_v1, %v723_v7  ;;  %v889_v1 = vsub.s32 1, %v2132_v40  ;;  %v894_v4 = vrot.slane %v879_v63, %v893_v0 }
 0x10c   :  { %v890_v5 = vrot.slane %v879_v63, %v889_v1 }
 0x124   :  { %v1739_v11 = vpop.f32.mrb[4].mxu0 }
 0x125   :  { %v1761_v12 = vpop.f32.mrb[4].mxu1  ;;  %v1740_v13 = vpop.f32.mrb[5].mxu0 }
 0x126   :  { %v1762_v14 = vpop.f32.mrb[5].mxu1  ;;  %v1741_v15 = vadd.f32 %v1740_v13, %v1739_v11  ;;  %v1742_v17 = vpop.f32.mrb[6].mxu0  ;;  %v901_v11 = vsub.s32 4, %v2132_v40 }
 0x127   :  { %v1763_v16 = vadd.f32 %v1762_v14, %v1761_v12  ;;  %v1764_v18 = vpop.f32.mrb[6].mxu1  ;;  %v1743_v19 = vpop.f32.mrb[7].mxu0  ;;  %v905_v17 = vsub.s32 5, %v2132_v40 }
 0x128   :  { %v1765_v20 = vpop.f32.mrb[7].mxu1  ;;  %v803_v21 = vadd.f32 %v1741_v15, %v763_v8  ;;  %v902_v32 = vrot.slane %v879_v63, %v901_v11 }
 0x12a   :  { %v843_v23 = vadd.f32 %v1763_v16, %v803_v21  ;;  %v909_v16 = vsub.s32 6, %v2132_v40 }
 0x12c   :  { %v855_v26 = vadd.f32 %v1657_v22, %v843_v23 }
 0x12e   :  { %1423 = vrot.lane.b32.xlu0 %v855_v26, %s1940_s23  ;;  %v856_v29 = vmul.f32 1.442695, %v855_v26 }
 0x130   :  { %1883 = vpow2.f32 %v856_v29 }
 0x13a   :  { %v1884_v41 = vpop.eup %1883 }
 0x13b   :  { %v862_v42 = vmul.f32 %v1884_v41, %v860_v39  ;;  %v910_v39 = vrot.slane %v879_v63, %v909_v16  ;;  %v906_v41 = vrot.slane %v879_v63, %v905_v17 }
 0x13d   :  { %864 = vrot.lane.b32.xlu1 %v862_v42, %s1941_s11 }
 0x141   :  { %1407 = vrot.lane.b32.xlu1 %v855_v26, %s1941_s11  ;;  %s1953_s11 = smov 27  }
 0x1a0   :  { %v1424_v53 = vpop.permute.xlu0 %1423 }
 0x1a1   :  { %v1426_v55 = vsel %vm1386_vm1, %v1424_v53, 0.0 }
 0x1af   :  { %v865_v43 = vpop.permute.xlu1 %864 }
 0x1b0   :  { %v2317_v45 = vadd.f32 %v865_v43, %v855_v26  ;;  %v913_v26 = vsub.s32 7, %v2132_v40 }
 0x1b2   :  { %v868_v47 = vpack.c.bf16 %v2317_v45, %v2317_v45  ;;  %v1385_v49 = vmul.f32 %v2317_v45, %v2317_v45 }
 0x1b3   :  { %v1408_v51 = vpop.permute.xlu1 %1407 }
 0x1b4   :  { %1393 = vrot.lane.b32.xlu1 %v1385_v49, %s1939_s4  ;;  %1668 = vmatmul.mubr.msk.bf16.vlgmr.msra.gmra.mrb[8].mxu0 %vm974_vm0, %v868_v47  ;;  %v1410_v52 = vsel %vm1386_vm1, %v1408_v51, 0.0  ;;  %v1387_v58 = vsel %vm1386_vm1, %v1385_v49, 0.0 }
 0x1b5   :  { %1669 = vmatmul.mubr.msk.bf16.vlgmr.msra.gmra.mrb[8].mxu1 %vm974_vm0, %v868_v47  ;;  %1061 = vmatpush1.bf16.msra.mxu0 %v1876_v46  ;;  %v914_v46 = vrot.slane %v879_v63, %v913_v26 }
 0x1b6   :  { %1411 = vadd.xlane.f32.xlu0 %v1410_v52  ;;  %1102 = vmatpush1.bf16.msra.mxu1 %v1879_v50 }
 0x1b7   :  { %1092 = vmatprep.mubr.bf16.mxu0 %v1936_v2  ;;  %1133 = vmatprep.mubr.bf16.mxu1 %v1936_v2  ;;  %v1402_v2 = vsel %vm1386_vm1, %v2289_v56, 0.0  ;;  %v897_v56 = vsub.s32 3, %v2132_v40 }
 0x1b8   :  { %1769 = vmatprep.subr.bf16.mxu0 %v1942_v54 }
 0x1b9   :  { %v898_v6 = vrot.slane %v879_v63, %v897_v56 }
 0x1ba   :  { %1427 = vadd.xlane.f32.xlu0 %v1426_v55 }
 0x1bc   :  { %1670 = vmatmul.mubr.msk.bf16.vlgmr.msra.gmra.mrb[12].mxu0 %vm974_vm0, %v868_v47 }
 0x1bd   :  { %1671 = vmatmul.mubr.msk.bf16.vlgmr.msra.gmra.mrb[12].mxu1 %vm974_vm0, %v868_v47  ;;  %1770 = vmatpush3.bf16.msra.mxu0 %v1882_v57 }
 0x1be   :  { %1388 = vadd.xlane.f32.xlu0 %v1387_v58  ;;  %1771 = vmatprep.mubr.msk.bf16.mxu0 %vm1943_vm2, %v1942_v54 }
 0x1c4   :  { %1772 = vmatmul.mubr.msk.bf16.vlgmr.msra.gmra.mrb[16].mxu0 %vm974_vm0, %v868_v47 }
 0x1d8   :  { %1403 = vadd.xlane.f32.xlu1 %v1402_v2 }
 0x1dc   :  { %1420 = vadd.xlane.f32.xlu1 %v1419_v59 }
 0x226   :  { %v1394_v60 = vpop.permute.xlu1 %1393 }
 0x227   :  { %v1396_v61 = vsel %vm1386_vm1, %v1394_v60, 0.0 }
 0x228   :  { %1397 = vadd.xlane.f32.xlu1 %v1396_v61 }
 0x287   :  { %v1012_v7 = vpop.f32.mrb[8].mxu0 }
 0x288   :  { %v1013_v8 = vadd.f32 %v1012_v7, %v886_v3  ;;  %v1053_v9 = vpop.f32.mrb[8].mxu1  ;;  %v1014_v10 = vpop.f32.mrb[9].mxu0 }
 0x289   :  { %v1054_v12 = vadd.f32 %v1053_v9, %v894_v4  ;;  %v1015_v13 = vadd.f32 %v1014_v10, %v890_v5  ;;  %v1055_v14 = vpop.f32.mrb[9].mxu1  ;;  %v1016_v15 = vpop.f32.mrb[10].mxu0 }
 0x28a   :  { %v1056_v18 = vadd.f32 %v1055_v14, %v898_v6  ;;  %v1057_v19 = vpop.f32.mrb[10].mxu1  ;;  %v1017_v20 = vpop.f32.mrb[11].mxu0  ;;  %v1658_v14 = vld [vmem:[%s2436_s9 + $0x8] ss:$0 sm:$0xff]  ;;  %s1944_s9 = smov 126  }
 0x28b   :  { %v1190_v21 = vcombine.low %v1013_v8, %v1015_v13  ;;  %v1191_v22 = vcombine.high %v1013_v8, %v1015_v13  ;;  %v1058_v23 = vpop.f32.mrb[11].mxu1 }
 0x28c   :  { %v1192_v29 = vcombine.low %v1054_v12, %v1056_v18  ;;  %v1193_v30 = vcombine.high %v1054_v12, %v1056_v18 }
 0x28d   :  { %v1200_v33 = vrot.slane %v1190_v21, %v2149_v48  ;;  %v1207_v38 = vrot.slane %v1191_v22, %v2149_v48 }
 0x28e   :  { %v1214_v42 = vrot.slane %v1192_v29, %v2149_v48  ;;  %v1221_v43 = vrot.slane %v1193_v30, %v2149_v48 }
 0x28f   :  { %v1094_v44 = vpop.f32.mrb[12].mxu0 }
 0x290   :  { %v1222_v47 = vcombine.low %v1200_v33, %v1214_v42  ;;  %v1223_v49 = vcombine.high %v1200_v33, %v1214_v42  ;;  %v1224_v50 = vcombine.low %v1207_v38, %v1221_v43  ;;  %v1225_v51 = vcombine.high %v1207_v38, %v1221_v43  ;;  %v1135_v40 = vpop.f32.mrb[12].mxu1  ;;  %v1096_v52 = vpop.f32.mrb[13].mxu0 }
 0x291   :  { %v1095_v53 = vadd.f32 %v1094_v44, %v902_v32  ;;  %v1136_v54 = vadd.f32 %v1135_v40, %v910_v39  ;;  %v1097_v55 = vadd.f32 %v1096_v52, %v906_v41  ;;  %v1137_v57 = vpop.f32.mrb[13].mxu1  ;;  %v1098_v58 = vpop.f32.mrb[14].mxu0 }
 0x292   :  { %v1270_v2 = vsub.f32 %v2115_v34, %v1222_v47  ;;  %v1272_v59 = vsub.f32 %v2120_v35, %v1223_v49  ;;  %v1274_v60 = vsub.f32 %v2125_v36, %v1224_v50  ;;  %v1276_v61 = vsub.f32 %v2130_v37, %v1225_v51  ;;  %v1139_v62 = vpop.f32.mrb[14].mxu1  ;;  %v1099_v63 = vpop.f32.mrb[15].mxu0 }
 0x293   :  { %v1226_v0 = vcombine.low %v1095_v53, %v1097_v55  ;;  %v1227_v1 = vcombine.high %v1095_v53, %v1097_v55  ;;  %v1138_v56 = vadd.f32 %v1137_v57, %v914_v46  ;;  %v1140_v3 = vpop.f32.mrb[15].mxu1 }
 0x294   :  { %v1278_v4 = vmul.f32 %v1270_v2, %v1270_v2  ;;  %v1280_v5 = vmul.f32 %v1272_v59, %v1272_v59  ;;  %v1282_v6 = vmul.f32 %v1274_v60, %v1274_v60  ;;  %v1284_v7 = vmul.f32 %v1276_v61, %v1276_v61 }
 0x295   :  { %v1236_v8 = vrot.slane %v1226_v0, %v2149_v48  ;;  %v1243_v34 = vrot.slane %v1227_v1, %v2149_v48  ;;  %v1228_v9 = vcombine.low %v1136_v54, %v1138_v56  ;;  %v1229_v35 = vcombine.high %v1136_v54, %v1138_v56 }
 0x296   :  { %v1294_v10 = vcombine.low %v1278_v4, %v1280_v5  ;;  %v1295_v36 = vcombine.high %v1278_v4, %v1280_v5  ;;  %v1296_v11 = vcombine.low %v1282_v6, %v1284_v7  ;;  %v1297_v37 = vcombine.high %v1282_v6, %v1284_v7 }
 0x297   :  { %v1250_v12 = vrot.slane %v1228_v9, %v2149_v48  ;;  %v1257_v13 = vrot.slane %v1229_v35, %v2149_v48  ;;  %v1176_v15 = vpop.f32.mrb[16].mxu0 }
 0x298   :  { %v1304_v16 = vrot.slane %v1294_v10, %v2149_v48  ;;  %v1311_v17 = vrot.slane %v1295_v36, %v2149_v48  ;;  %v1318_v18 = vrot.slane %v1296_v11, %v2149_v48  ;;  %v1325_v19 = vrot.slane %v1297_v37, %v2149_v48  ;;  %v1773_v20 = vpop.f32.mrb[17].mxu0 }
 0x299   :  { %v1258_v21 = vcombine.low %v1236_v8, %v1250_v12  ;;  %v1259_v22 = vcombine.high %v1236_v8, %v1250_v12  ;;  %v1260_v23 = vcombine.low %v1243_v34, %v1257_v13  ;;  %v1261_v26 = vcombine.high %v1243_v34, %v1257_v13  ;;  %v1179_v29 = vpop.f32.mrb[18].mxu0 }
 0x29a   :  { %v1326_v30 = vcombine.low %v1304_v16, %v1318_v18  ;;  %v1327_v32 = vcombine.high %v1304_v16, %v1318_v18  ;;  %v2377_v33 = vadd.f32 %v1658_v14, %v1176_v15  ;;  %v1774_v38 = vpop.f32.mrb[19].mxu0  ;;  %v1328_v39 = vcombine.low %v1311_v17, %v1325_v19 }
 0x29b   :  { %v1271_v41 = vsub.f32 %v2236_v24, %v1258_v21  ;;  %v1273_v42 = vsub.f32 %v2241_v25, %v1259_v22  ;;  %v1275_v43 = vsub.f32 %v2249_v27, %v1260_v23  ;;  %v1277_v44 = vsub.f32 %v2254_v28, %v1261_v26  ;;  %v1404_v26 = vpop.xlane.xlu1 %1403 }
 0x29c   :  { %v1434_v46 = vand.u32 2147483647, %v2377_v33  ;;  %1469 = vrot.lane.b32.xlu0 %v2377_v33, %s1944_s9  ;;  %1460 = vrot.lane.b32.xlu1 %v2377_v33, %s1945_s18  ;;  %v1329_v47 = vcombine.high %v1311_v17, %v1325_v19  ;;  %v1374_v49 = vadd.f32 %v1327_v32, %v1326_v30  ;;  %v1678_v28 = vmul.f32 -1.442695, %v2377_v33 }
 0x29d   :  { %v1279_v50 = vmul.f32 %v1271_v41, %v1271_v41  ;;  %v1281_v24 = vmul.f32 %v1273_v42, %v1273_v42  ;;  %v1283_v51 = vmul.f32 %v1275_v43, %v1275_v43  ;;  %v1285_v25 = vmul.f32 %v1277_v44, %v1277_v44 }
 0x29e   :  { %v1435_v40 = vsub.f32 0.0, %v1434_v46  ;;  %v1375_v27 = vadd.f32 %v1374_v49, %v1328_v39  ;;  %1885 = vpow2.f32 %v1678_v28  ;;  %v1431_v37 = vmax.f32 %v2377_v33, 0.0 }
 0x29f   :  { %v1330_v52 = vcombine.low %v1279_v50, %v1281_v24  ;;  %v1332_v53 = vcombine.low %v1283_v51, %v1285_v25  ;;  %v1331_v54 = vcombine.high %v1279_v50, %v1281_v24  ;;  %v1333_v55 = vcombine.high %v1283_v51, %v1285_v25  ;;  %v1421_v29 = vpop.xlane.xlu1 %1420  ;;  %v59_v24 = vld [vmem:[%s2430_s3] sm:$0xff]  ;;  %s1949_s3 = smov 23  }
 0x2a0   :  { %v1436_v57 = vmul.f32 1.442695, %v1435_v40  ;;  %v1376_v58 = vadd.f32 %v1375_v27, %v1329_v47  ;;  %vm1432_vm4 = vcmp.ne.f32.partialorder %v2377_v33, %v2377_v33  ;;  %v1457_v15 = vmul.f32 %v2377_v33, %v2263_v31 }
 0x2a1   :  { %v1340_v2 = vrot.slane %v1330_v52, %v2149_v48  ;;  %v1347_v59 = vrot.slane %v1331_v54, %v2149_v48  ;;  %v1354_v60 = vrot.slane %v1332_v53, %v2149_v48  ;;  %v1361_v61 = vrot.slane %v1333_v55, %v2149_v48 }
 0x2a2   :  { %1887 = vpow2.f32 %v1436_v57  ;;  %v1502_v20 = vstv %s1589_s19  ;;  %v1495_v22 = vstv %s1590_s20  ;;  %v1405_v46 = vmul.f32 -0.5, %v1404_v26 }
 0x2a3   :  { %v1362_v62 = vcombine.low %v1340_v2, %v1354_v60  ;;  %v1363_v63 = vcombine.high %v1340_v2, %v1354_v60  ;;  %v1364_v0 = vcombine.low %v1347_v59, %v1361_v61  ;;  %v1365_v1 = vcombine.high %v1347_v59, %v1361_v61 }
 0x2a4   :  { %v1422_v50 = vmul.f32 -0.5, %v1421_v29  ;;  %v1484_v61 = vstv %s1483_s27 }
 0x2a5   :  { %v1377_v56 = vadd.f32 %v1376_v58, %v1362_v62  ;;  %v1486_v62 = vstv %s1587_s25 }
 0x2a7   :  { %v1378_v3 = vadd.f32 %v1377_v56, %v1363_v63 }
 0x2a8   :  { %v1886_v5 = vpop.eup %1885 }
 0x2a9   :  { %v1379_v4 = vadd.f32 %v1378_v3, %v1364_v0  ;;  %v1452_v34 = vadd.f32 1.0, %v1886_v5 }
 0x2ab   :  { %v1380_v6 = vadd.f32 %v1379_v4, %v1365_v1  ;;  %v1489_v1 = vstv %s1588_s26  ;;  %v1492_v4 = vstv %s1591_s28 }
 0x2ac   :  { %v1888_v7 = vpop.eup %1887 }
 0x2ad   :  { %v1438_v8 = vadd.f32 1.0, %v1888_v7  ;;  %v1441_v9 = vmul.f32 -0.5, %v1888_v7  ;;  %v1444_v10 = vand.u32 2147483647, %v1888_v7 }
 0x2af   :  { %1889 = vlog2.f32 %v1438_v8  ;;  %v1442_v35 = vadd.f32 1.0, %v1441_v9  ;;  %vm1445_vm3 = vcmp.lt.f32.partialorder %v1444_v10, 0.0004427343 }
 0x2b0   :  { %1891 = vrcp.f32 %v1452_v34 }
 0x2b1   :  { %v1443_v11 = vmul.f32 %v1888_v7, %v1442_v35 }
 0x2b5   :  { %v1398_v30 = vpop.xlane.xlu1 %1397 }
 0x2b6   :  { %v1399_v25 = vmul.f32 -0.5, %v1398_v30 }
 0x2b8   :  { %v1675_v55 = vadd.f32 -7.351508, %v1399_v25 }
 0x2b9   :  { %v1890_v36 = vpop.eup %1889 }
 0x2ba   :  { %v1440_v48 = vmul.f32 0.6931472, %v1890_v36  ;;  %v1892_v13 = vpop.eup %1891 }
 0x2bb   :  { %1381 = vadd.xlane.f32.xlu0 %v1380_v6  ;;  %v1455_v17 = vmul.f32 %v1892_v13, %v2377_v33 }
 0x2bc   :  { %v1446_v12 = vsel %vm1445_vm3, %v1443_v11, %v1440_v48 }
 0x2bd   :  { %v1447_v14 = vadd.f32 %v1446_v12, %v1431_v37 }
 0x2bf   :  { %v1448_v16 = vsel %vm1432_vm4, %v2377_v33, %v1447_v14  ;;  %v1412_v33 = vpop.xlane.xlu0 %1411 }
 0x2c0   :  { %1465 = vrot.lane.b32.xlu1 %v1448_v16, %s1945_s18  ;;  %v2401_v18 = vsub.f32 %v1457_v15, %v1448_v16  ;;  %v1456_v19 = vsub.f32 %v1448_v16, %v1455_v17  ;;  %v1413_v49 = vsub.f32 %v1405_v46, %v1412_v33 }
 0x2c2   :  { %v1503_v21 = vmul.f32 %v1502_v20, %v1456_v19  ;;  %v1496_v23 = vmul.f32 %v1495_v22, %v1456_v19  ;;  %v1676_v28 = vadd.f32 -7.351508, %v1413_v49  ;;  %v1493_v7 = vmul.f32 %v1492_v4, %v2401_v18 }
 0x2c3   :  { %v1428_v43 = vpop.xlane.xlu0 %1427 }
 0x2c4   :  { %1473 = vrot.lane.b32.xlu1 %v1448_v16, %s1944_s9  ;;  %v1429_v52 = vsub.f32 %v1422_v50, %v1428_v43 }
 0x2c6   :  { %v1677_v2 = vadd.f32 -7.351508, %v1429_v52 }
 0x2c7   :  { %v1389_v44 = vpop.xlane.xlu0 %1388 }
 0x2c8   :  { %1505 = vrot.lane.b32.xlu1 %v1503_v21, %s1944_s9  ;;  %v1482_v63 = vsub.f32 %v1677_v2, %v1675_v55 }
 0x2ca   :  { %v1490_v5 = vmul.f32 %v1489_v1, %v1482_v63 }
 0x2cc   :  { %1514 = vrot.lane.b32.xlu1 %v1456_v19, %s1946_s21 }
 0x2d1   :  { %1498 = vrot.lane.b32.xlu0 %v1496_v23, %s1945_s18 }
 0x2d5   :  { %1517 = vrot.lane.b32.xlu0 %v1456_v19, %s1947_s6 }
 0x30e   :  { %v1461_v32 = vpop.permute.xlu1 %1460  ;;  %v1470_v51 = vpop.permute.xlu0 %1469 }
 0x30f   :  { %v1463_v38 = vmul.f32 %v1461_v32, %v2263_v31  ;;  %v1390_v31 = vmul.f32 -0.5, %v1389_v44  ;;  %v1472_v27 = vmul.f32 %v1470_v51, %v59_v24 }
 0x311   :  { %v1674_v54 = vadd.f32 -7.351508, %v1390_v31 }
 0x313   :  { %v1481_v58 = vsub.f32 %v1676_v28, %v1674_v54 }
 0x315   :  { %v1487_v3 = vmul.f32 %v1486_v62, %v1481_v58 }
 0x332   :  { %v1466_v39 = vpop.permute.xlu1 %1465 }
 0x333   :  { %v1468_v41 = vsub.f32 %v1463_v38, %v1466_v39 }
 0x335   :  { %v1477_v42 = vmul.f32 1.442695, %v1468_v41 }
 0x336   :  { %v1474_v40 = vpop.permute.xlu1 %1473 }
 0x337   :  { %1893 = vpow2.f32 %v1477_v42  ;;  %v1476_v53 = vsub.f32 %v1472_v27, %v1474_v40 }
 0x339   :  { %v1479_v60 = vmul.f32 1.442695, %v1476_v53 }
 0x33a   :  { %v1506_v10 = vpop.permute.xlu1 %1505 }
 0x33b   :  { %1895 = vpow2.f32 %v1479_v60 }
 0x33e   :  { %v1515_v11 = vpop.permute.xlu1 %1514 }
 0x341   :  { %v1894_v47 = vpop.eup %1893 }
 0x342   :  { %1521 = vrot.lane.b32.xlu1 %v1894_v47, %s1948_s24 }
 0x345   :  { %v1896_v48 = vpop.eup %1895 }
 0x348   :  { %v1382_v57 = vpop.xlane.xlu0 %1381 }
 0x349   :  { %v1383_v59 = vmul.f32 -0.5, %v1382_v57 }
 0x34b   :  { %v1673_v0 = vadd.f32 -940.99304, %v1383_v59 }
 0x34c   :  { %v1499_v9 = vpop.permute.xlu0 %1498 }
 0x34d   :  { %v1485_v56 = vmul.f32 %v1673_v0, %v1484_v61 }
 0x34f   :  { %v1488_v6 = vadd.f32 %v1487_v3, %v1485_v56 }
 0x350   :  { %v1518_v37 = vpop.permute.xlu0 %1517 }
 0x351   :  { %v1491_v8 = vadd.f32 %v1490_v5, %v1488_v6 }
 0x353   :  { %v1494_v34 = vsub.f32 %v1491_v8, %v1493_v7 }
 0x355   :  { %v1501_v35 = vsub.f32 %v1494_v34, %v1499_v9  ;;  %1510 = vrot.lane.b32.xlu0 %v1494_v34, %s1938_s17 }
 0x357   :  { %v1508_v36 = vsub.f32 %v1501_v35, %v1506_v10 }
 0x359   :  { %1525 = vrot.lane.b32.xlu0 %v1896_v48, %s1949_s3  ;;  %1529 = vrot.lane.b32.xlu1 %v1508_v36, %s1950_s29 }
 0x35d   :  { %1533 = vrot.lane.b32.xlu0 %v2401_v18, %s1951_s7  ;;  %1537 = vrot.lane.b32.xlu1 %v1468_v41, %s1952_s30 }
 0x361   :  { %1541 = vrot.lane.b32.xlu0 %v1476_v53, %s1953_s11 }
 0x3b4   :  { %v1522_v12 = vpop.permute.xlu1 %1521 }
 0x3c7   :  { %v1511_v13 = vpop.permute.xlu0 %1510 }
 0x3c8   :  { %v1544_v14 = vsel %vm974_vm0, %v2317_v45, %v1511_v13  ;;  %vm1567_vm0 = vcmask 228352  }
 0x3c9   :  { %v1546_v15 = vsel %vm1545_vm5, %v1544_v14, %v1673_v0 }
 0x3ca   :  { %v1548_v16 = vsel %vm1547_vm6, %v1546_v15, %v1481_v58 }
 0x3cb   :  { %v1550_v17 = vsel %vm1549_vm7, %v1548_v16, %v1482_v63  ;;  %v1526_v18 = vpop.permute.xlu0 %1525  ;;  %v1530_v19 = vpop.permute.xlu1 %1529 }
 0x3cc   :  { %v1552_v20 = vsel %vm1551_vm8, %v1550_v17, %v1515_v11 }
 0x3cd   :  { %v1554_v21 = vsel %vm1553_vm9, %v1552_v20, %v1518_v37 }
 0x3ce   :  { %v1556_v22 = vsel %vm1555_vm10, %v1554_v21, %v1522_v12 }
 0x3cf   :  { %v1558_v23 = vsel %vm1557_vm11, %v1556_v22, %v1526_v18  ;;  %v1534_v26 = vpop.permute.xlu0 %1533  ;;  %v1538_v45 = vpop.permute.xlu1 %1537 }
 0x3d0   :  { %v1560_v29 = vsel %vm1559_vm12, %v1558_v23, %v1530_v19 }
 0x3d1   :  { %v1562_v30 = vsel %vm1561_vm13, %v1560_v29, %v1534_v26 }
 0x3d2   :  { %v1564_v32 = vsel %vm1563_vm14, %v1562_v30, %v1538_v45 }
 0x3d3   :  { %v1542_v33 = vpop.permute.xlu0 %1541 }
 0x3d4   :  { %v1566_v38 = vsel %vm1565_vm15, %v1564_v32, %v1542_v33 }
 0x3d5   :  { %v1568_v39 = vsel %vm1567_vm0, %v1566_v38, 0.0 }
 0x3d6   :  { %1569 = vst [vmem:[#allocation5] sm:$0xff] %v1568_v39 }
 0x3d7   :  { %1574 = vsyncadd [#allocation3], 96  ;;  %s1954_s17 = smov [#allocation5]  }
 0x3d8   :  { %s1575_s12 = sshll.u32 %s1954_s17, 4  ;;  %s1576_s12 = int_to_ptr.vmem [resolvable:$true] %s1575_s12 }
 0x3d9   :  { %s1909_s1 = scalar_lea.vmem %s1576_s12, 32  ;;  %s1913_s2 = scalar_lea.vmem %s1576_s12, 128 }
 0x3da   :  { %p1910_p5 = scmp.ne.s32.totalorder %s1576_s12, %s1909_s1  ;;  %p1914_p6 = scmp.lt.s32.totalorder %s1576_s12, %s1576_s12 }
 0x3db   :  { %p1915_p7 = scmp.lt.s32.totalorder %s1913_s2, %s1909_s1 }
 0x3dd   :  { %p1916_p8 = por %p1915_p7, %p1914_p6 }
 0x3df   :  { %p1917_p9 = pnand %p1916_p8, %p1910_p5 }
 0x3e1   :  { %1920 = shalt.err (!%p1917_p9)
}
 0x3e2   :  { %s1921_s15 = scalar_lea.hbm %s2437_s10, 32 }
 0x3e3   :  { %p1922_p10 = scmp.ne.s32.totalorder %s2437_s10, %s1921_s15  ;;  %p1925_p11 = scmp.lt.u32.totalorder %s1921_s15, %s2437_s10 }
 0x3e5   :  { %p1927_p12 = pnand %p1925_p11, %p1922_p10 }
 0x3e7   :  { %1930 = shalt.err (!%p1927_p12)
}
 0x3e8   :  { %s1955_s9 = smov 32   ;;  %s1956_s18 = smov 2  }
 0x3e9   :  { %1581 = dma.vmem_to_hbm [thread:$0]  %s1576_s12, 32, %s2437_s10, [#allocation3], %s1955_s9, %s1955_s9, %s1956_s18  }
 0x3ea   :  { %1933 = dma.done.wait [#allocation3], 128  }
 0x3eb   :  { %1934 = vsyncadd [#allocation3], 4294967168 }
 0x3ec   :  { %1585 = vsyncpa [#allocation3], 1 }
 0x3ed   :  { %1586 = vsyncpa [#allocation4], 1 }

</bundles_post_ra>
